<compile_context>
chip_gen: v6e
topology: v6e:2x2x1
jax: 0.10.0
libtpu: 0.0.40
codegen_flags: <defaults>
</compile_context>

<pallas_src>
import jax
import jax.numpy as jnp
from jax.experimental import pallas as pl
from jax.experimental.pallas import tpu as pltpu


def _round_up(n, m):
    return (n + m - 1) // m * m


def _node_kernel(ts_ref, x_ref, w1_ref, b1_ref, bt_ref, w2_ref, b2_ref, o_ref):
    # ts_ref: (TB, 2) f32   col 0 = t, col 1 = elementwise scale
    t = ts_ref[:, 0:1]                                  # (TB, 1)
    scale = ts_ref[:, 1:2]                              # (TB, 1)
    x = x_ref[...]                                      # (TB, Dp) bf16

    # df(t, x): time-conditioned 2-layer MLP.  bf16 MXU inputs, f32 accumulate.
    h = jnp.tanh(
        jnp.dot(x, w1_ref[...], preferred_element_type=jnp.float32)
        + b1_ref[...]
        + t * bt_ref[...]
    )                                                   # (TB, Hp) f32
    y = jnp.dot(h.astype(jnp.bfloat16), w2_ref[...],
                preferred_element_type=jnp.float32) + b2_ref[...]   # (TB, Dp) f32

    # NODE wrapper: elementwise scale by elem_t (ones when elem_t is None).
    o_ref[...] = (scale * y).astype(o_ref.dtype)


def _node_pallas(ts, x_pad, w1, b1, bt, w2, b2, tb):
    bp, dp = x_pad.shape
    hp = w1.shape[1]
    grid = (bp // tb,)

    cost = pl.CostEstimate(
        flops=2 * bp * dp * hp * 2,              # two matmuls
        transcendentals=bp * hp,                 # tanh
        bytes_accessed=(ts.size * 4 + x_pad.size * 2
                        + w1.size * 2 + w2.size * 2
                        + (b1.size + bt.size + b2.size) * 4
                        + bp * dp * 4),
    )

    return pl.pallas_call(
        _node_kernel,
        out_shape=jax.ShapeDtypeStruct((bp, dp), jnp.float32),
        grid_spec=pltpu.PrefetchScalarGridSpec(
            num_scalar_prefetch=0,
            grid=grid,
            in_specs=[
                pl.BlockSpec((tb, 2), lambda i: (i, 0)),     # t / scale
                pl.BlockSpec((tb, dp), lambda i: (i, 0)),    # x tile
                pl.BlockSpec((dp, hp), lambda i: (0, 0)),    # W1 (resident)
                pl.BlockSpec((1, hp), lambda i: (0, 0)),     # b1
                pl.BlockSpec((1, hp), lambda i: (0, 0)),     # b_t
                pl.BlockSpec((hp, dp), lambda i: (0, 0)),    # W2 (resident)
                pl.BlockSpec((1, dp), lambda i: (0, 0)),     # b2
            ],
            out_specs=pl.BlockSpec((tb, dp), lambda i: (i, 0)),
        ),
        compiler_params=pltpu.CompilerParams(
            dimension_semantics=("parallel",),
            vmem_limit_bytes=64 * 1024 * 1024,
        ),
        cost_estimate=cost,
    )(ts, x_pad, w1, b1, bt, w2, b2)


class NODE:
    """JAX/Pallas port of the PyTorch NODE module with a concrete MLP `df`."""

    def __init__(self, dim, hidden, key):
        k1, k2, k3, k4, k5 = jax.random.split(key, 5)
        s1 = 1.0 / jnp.sqrt(dim)
        s2 = 1.0 / jnp.sqrt(hidden)
        # Unpadded f32 parameters (kept for the reference path).
        self.w1 = jax.random.uniform(k1, (dim, hidden), jnp.float32, -s1, s1)
        self.b1 = jax.random.uniform(k2, (1, hidden), jnp.float32, -s1, s1)
        self.bt = jax.random.uniform(k3, (1, hidden), jnp.float32, -s1, s1)
        self.w2 = jax.random.uniform(k4, (hidden, dim), jnp.float32, -s2, s2)
        self.b2 = jax.random.uniform(k5, (1, dim), jnp.float32, -s2, s2)

        # Lane-dense padded copies (features -> multiples of 128 lanes),
        # matmul operands pre-cast to bf16.  Zero padding keeps the math exact.
        self.dim = dim
        self.hidden = hidden
        self.dp = _round_up(dim, 128)
        self.hp = _round_up(hidden, 128)
        pad2 = lambda a, r, c: jnp.pad(a, ((0, r - a.shape[0]), (0, c - a.shape[1])))
        self.w1_p = pad2(self.w1, self.dp, self.hp).astype(jnp.bfloat16)
        self.w2_p = pad2(self.w2, self.hp, self.dp).astype(jnp.bfloat16)
        self.b1_p = pad2(self.b1, 1, self.hp)
        self.bt_p = pad2(self.bt, 1, self.hp)
        self.b2_p = pad2(self.b2, 1, self.dp)

        self.nfe = 0
        self.elem_t = None

    def update(self, elem_t):
        # matches PyTorch: elem_t.view(*elem_t.shape, 1)
        self.elem_t = elem_t.reshape(*elem_t.shape, 1)

    def __call__(self, t, x):
        self.nfe += 1
        B, D = x.shape

        # Merge t and the elementwise scale into one (B, 2) tile.
        if self.elem_t is None:
            t_col = jnp.full((B, 1), t, dtype=jnp.float32)
            scale_col = jnp.ones((B, 1), dtype=jnp.float32)
        else:
            t_col = self.elem_t.astype(jnp.float32)
            scale_col = self.elem_t.astype(jnp.float32)
        ts = jnp.concatenate([t_col, scale_col], axis=1)          # (B, 2)

        # Batch tiling: largest tile <= 512 rows (multiple of 8 sublanes).
        tb = min(512, _round_up(B, 8))
        bp = _round_up(B, tb)

        ts_p = jnp.pad(ts, ((0, bp - B), (0, 0)))
        x_p = jnp.pad(x.astype(jnp.float32),
                      ((0, bp - B), (0, self.dp - D))).astype(jnp.bfloat16)

        out = _node_pallas(ts_p, x_p, self.w1_p, self.b1_p, self.bt_p,
                           self.w2_p, self.b2_p, tb)
        return out[:B, :D]


def _ref_forward(node, t_vec, scale, x):
    h = jnp.tanh(x @ node.w1 + node.b1 + t_vec * node.bt)
    return scale * (h @ node.w2 + node.b2)


if __name__ == "__main__":
    key = jax.random.PRNGKey(0)
    k_param, k_x, k_elem = jax.random.split(key, 3)

    batch, dim, hidden = 8, 32, 64
    node = NODE(dim, hidden, k_param)
    x = jax.random.normal(k_x, (batch, dim), jnp.float32)

    # Path 1: elem_t is None -> df(t, x)
    t = jnp.float32(0.5)
    out1 = node(t, x)
    jax.block_until_ready(out1)
    ref1 = _ref_forward(node, jnp.full((batch, 1), t, jnp.float32),
                        jnp.ones((batch, 1), jnp.float32), x)
    assert out1.shape == (batch, dim)
    assert jnp.allclose(out1, ref1, atol=5e-2, rtol=5e-2)   # bf16 MXU inputs

    # Path 2: elem_t set via update() -> elem_t * df(elem_t, x)
    elem_t = jax.random.uniform(k_elem, (batch,), jnp.float32)
    node.update(elem_t)
    out2 = node(t, x)
    jax.block_until_ready(out2)
    elem_col = elem_t.reshape(batch, 1)
    ref2 = _ref_forward(node, elem_col, elem_col, x)
    assert jnp.allclose(out2, ref2, atol=5e-2, rtol=5e-2)

    assert node.nfe == 2
    print("KERNEL_OK")
</pallas_src>

<mosaic_0001>
module attributes {stable_mosaic.version = 11 : i64} {
  func.func @_node_kernel(%arg0: i32, %arg1: memref<8x2xf32, #tpu.memory_space<vmem>>, %arg2: memref<8x128xbf16, #tpu.memory_space<vmem>>, %arg3: memref<128x128xbf16, #tpu.memory_space<vmem>>, %arg4: memref<1x128xf32, #tpu.memory_space<vmem>>, %arg5: memref<1x128xf32, #tpu.memory_space<vmem>>, %arg6: memref<128x128xbf16, #tpu.memory_space<vmem>>, %arg7: memref<1x128xf32, #tpu.memory_space<vmem>>, %arg8: memref<8x128xf32, #tpu.memory_space<vmem>>) attributes {dimension_semantics = [#tpu.dimension_semantics<parallel>], iteration_bounds = array<i64: 1>, scalar_prefetch = 0 : i64, scratch_operands = 0 : i64, tpu.core_type = #tpu.core_type<tc>, window_params = [{transform_indices = @transform_0, window_bounds = array<i64: 8, 2>}, {transform_indices = @transform_1, window_bounds = array<i64: 8, 128>}, {pipeline_mode = #tpu.pipeline_mode<synchronous>, transform_indices = @transform_2, window_bounds = array<i64: 128, 128>}, {pipeline_mode = #tpu.pipeline_mode<synchronous>, transform_indices = @transform_3, window_bounds = array<i64: 1, 128>}, {pipeline_mode = #tpu.pipeline_mode<synchronous>, transform_indices = @transform_4, window_bounds = array<i64: 1, 128>}, {pipeline_mode = #tpu.pipeline_mode<synchronous>, transform_indices = @transform_5, window_bounds = array<i64: 128, 128>}, {pipeline_mode = #tpu.pipeline_mode<synchronous>, transform_indices = @transform_6, window_bounds = array<i64: 1, 128>}, {transform_indices = @transform_7, window_bounds = array<i64: 8, 128>}]} {
    %c0 = arith.constant 0 : index
    %c0_0 = arith.constant 0 : index
    %0 = vector.load %arg1[%c0, %c0_0] : memref<8x2xf32, #tpu.memory_space<vmem>>, vector<8x1xf32>
    %c0_1 = arith.constant 0 : index
    %c1 = arith.constant 1 : index
    %1 = vector.load %arg1[%c0_1, %c1] : memref<8x2xf32, #tpu.memory_space<vmem>>, vector<8x1xf32>
    %c0_2 = arith.constant 0 : index
    %c0_3 = arith.constant 0 : index
    %2 = vector.load %arg2[%c0_2, %c0_3] : memref<8x128xbf16, #tpu.memory_space<vmem>>, vector<8x128xbf16>
    %c0_4 = arith.constant 0 : index
    %c0_5 = arith.constant 0 : index
    %3 = vector.load %arg3[%c0_4, %c0_5] : memref<128x128xbf16, #tpu.memory_space<vmem>>, vector<128x128xbf16>
    %cst = arith.constant dense<0.000000e+00> : vector<8x128xf32>
    %4 = tpu.matmul %2, %3, %cst {dimension_numbers = #tpu.dot_dimension_numbers<[1], [0], [0], [1], [0, 0, 1, 1], [], []>} : vector<8x128xbf16>, vector<128x128xbf16>, vector<8x128xf32> -> vector<8x128xf32>
    %c0_6 = arith.constant 0 : index
    %c0_7 = arith.constant 0 : index
    %5 = vector.load %arg4[%c0_6, %c0_7] : memref<1x128xf32, #tpu.memory_space<vmem>>, vector<1x128xf32>
    %6 = vector.broadcast %5 : vector<1x128xf32> to vector<8x128xf32>
    %7 = arith.addf %4, %6 : vector<8x128xf32>
    %c0_8 = arith.constant 0 : index
    %c0_9 = arith.constant 0 : index
    %8 = vector.load %arg5[%c0_8, %c0_9] : memref<1x128xf32, #tpu.memory_space<vmem>>, vector<1x128xf32>
    %9 = vector.broadcast %0 : vector<8x1xf32> to vector<8x128xf32>
    %10 = vector.broadcast %8 : vector<1x128xf32> to vector<8x128xf32>
    %11 = arith.mulf %9, %10 : vector<8x128xf32>
    %12 = arith.addf %7, %11 : vector<8x128xf32>
    %13 = math.tanh %12 : vector<8x128xf32>
    %14 = arith.truncf %13 : vector<8x128xf32> to vector<8x128xbf16>
    %c0_10 = arith.constant 0 : index
    %c0_11 = arith.constant 0 : index
    %15 = vector.load %arg6[%c0_10, %c0_11] : memref<128x128xbf16, #tpu.memory_space<vmem>>, vector<128x128xbf16>
    %cst_12 = arith.constant dense<0.000000e+00> : vector<8x128xf32>
    %16 = tpu.matmul %14, %15, %cst_12 {dimension_numbers = #tpu.dot_dimension_numbers<[1], [0], [0], [1], [0, 0, 1, 1], [], []>} : vector<8x128xbf16>, vector<128x128xbf16>, vector<8x128xf32> -> vector<8x128xf32>
    %c0_13 = arith.constant 0 : index
    %c0_14 = arith.constant 0 : index
    %17 = vector.load %arg7[%c0_13, %c0_14] : memref<1x128xf32, #tpu.memory_space<vmem>>, vector<1x128xf32>
    %18 = vector.broadcast %17 : vector<1x128xf32> to vector<8x128xf32>
    %19 = arith.addf %16, %18 : vector<8x128xf32>
    %20 = vector.broadcast %1 : vector<8x1xf32> to vector<8x128xf32>
    %21 = arith.mulf %20, %19 : vector<8x128xf32>
    %c0_15 = arith.constant 0 : index
    %c0_16 = arith.constant 0 : index
    %22 = vector.load %arg8[%c0_15, %c0_16] : memref<8x128xf32, #tpu.memory_space<vmem>>, vector<8x128xf32>
    tpu.vector_store %arg8[%c0_15, %c0_16], %21 {strides = array<i32>} : memref<8x128xf32, #tpu.memory_space<vmem>>, vector<8x128xf32>,
    return
  }
  func.func @transform_0(%arg0: i32) -> (i32, i32) {
    %c0_i32 = arith.constant 0 : i32
    %c0_i32_0 = arith.constant 0 : i32
    return %arg0, %c0_i32 : i32, i32
  }
  func.func @transform_1(%arg0: i32) -> (i32, i32) {
    %c0_i32 = arith.constant 0 : i32
    %c0_i32_0 = arith.constant 0 : i32
    return %arg0, %c0_i32 : i32, i32
  }
  func.func @transform_2(%arg0: i32) -> (i32, i32) {
    %c0_i32 = arith.constant 0 : i32
    %c0_i32_0 = arith.constant 0 : i32
    %c0_i32_1 = arith.constant 0 : i32
    return %c0_i32, %c0_i32_0 : i32, i32
  }
  func.func @transform_3(%arg0: i32) -> (i32, i32) {
    %c0_i32 = arith.constant 0 : i32
    %c0_i32_0 = arith.constant 0 : i32
    %c0_i32_1 = arith.constant 0 : i32
    return %c0_i32, %c0_i32_0 : i32, i32
  }
  func.func @transform_4(%arg0: i32) -> (i32, i32) {
    %c0_i32 = arith.constant 0 : i32
    %c0_i32_0 = arith.constant 0 : i32
    %c0_i32_1 = arith.constant 0 : i32
    return %c0_i32, %c0_i32_0 : i32, i32
  }
  func.func @transform_5(%arg0: i32) -> (i32, i32) {
    %c0_i32 = arith.constant 0 : i32
    %c0_i32_0 = arith.constant 0 : i32
    %c0_i32_1 = arith.constant 0 : i32
    return %c0_i32, %c0_i32_0 : i32, i32
  }
  func.func @transform_6(%arg0: i32) -> (i32, i32) {
    %c0_i32 = arith.constant 0 : i32
    %c0_i32_0 = arith.constant 0 : i32
    %c0_i32_1 = arith.constant 0 : i32
    return %c0_i32, %c0_i32_0 : i32, i32
  }
  func.func @transform_7(%arg0: i32) -> (i32, i32) {
    %c0_i32 = arith.constant 0 : i32
    %c0_i32_0 = arith.constant 0 : i32
    return %arg0, %c0_i32 : i32, i32
  }
}

</mosaic_0001>

<bundles_post_ra>
// kernel: tpu_custom_call.1
= control target key start
LH: loop header
LB: loop body
LE: loop exit
PB: predicated region body
PF: predicated region fallthrough
CT: control target
= control target key end

     0   :  { %12 = vsyncpa [#allocation3], 0  ;;  %s563_s0 = inlined_call_operand.vmem [shape: f32[8,2], index: 0, kind: input, shape index: {}]   ;;  %s564_s1 = inlined_call_operand.vmem [shape: bf16[8,128], index: 1, kind: input, shape index: {}]   ;;  %s565_s2 = inlined_call_operand.hbm [shape: bf16[128,128], index: 2, kind: input, shape index: {}]   ;;  %s566_s3 = inlined_call_operand.vmem [shape: f32[1,128], index: 3, kind: input, shape index: {}]   ;;  %s567_s4 = inlined_call_operand.vmem [shape: f32[1,128], index: 4, kind: input, shape index: {}]   ;;  %s568_s5 = inlined_call_operand.hbm [shape: bf16[128,128], index: 5, kind: input, shape index: {}]   ;;  %s569_s6 = inlined_call_operand.vmem [shape: f32[1,128], index: 6, kind: input, shape index: {}]   ;;  %s570_s7 = inlined_call_operand.hbm [shape: f32[8,128], index: 7, kind: output, shape index: {}]  }
   0x1   :  { %13 = vsyncpa [#allocation6], 0 }
   0x2   :  { %14 = vsyncpa [#allocation4], 0  ;;  %s490_s24 = smov [#allocation2]  }
   0x3   :  { %s24_s25 = sshll.u32 %s490_s24, 4  ;;  %s25_s25 = int_to_ptr.vmem [resolvable:$true] %s24_s25 }
   0x4   :  { %s432_s26 = scalar_lea.vmem %s25_s25, 1024  ;;  %p437_p1 = scmp.lt.s32.totalorder %s25_s25, %s25_s25 }
   0x5   :  { %p433_p0 = scmp.ne.s32.totalorder %s25_s25, %s432_s26  ;;  %p438_p2 = scmp.lt.s32.totalorder %s432_s26, %s432_s26 }
   0x7   :  { %p439_p3 = por %p438_p2, %p437_p1 }
   0x9   :  { %p440_p4 = pnand %p439_p3, %p433_p0 }
   0xb   :  { %443 = shalt.err (!%p440_p4)
}
   0xc   :  { %s491_s27 = smov 64   ;;  %s492_s28 = smov 4  }
   0xd   :  { %30 = dma.hbm_to_vmem [thread:$0]  %s565_s2, 1024, %s25_s25, [#allocation3], %s491_s27, %s491_s27, %s492_s28  }
   0xe   :  { %s493_s8 = smov [#allocation5]  }
   0xf   :  { %s40_s9 = sshll.u32 %s493_s8, 4  ;;  %s41_s9 = int_to_ptr.vmem [resolvable:$true] %s40_s9 }
  0x10   :  { %s452_s10 = scalar_lea.vmem %s41_s9, 1024  ;;  %p457_p6 = scmp.lt.s32.totalorder %s41_s9, %s41_s9 }
  0x11   :  { %p453_p5 = scmp.ne.s32.totalorder %s41_s9, %s452_s10  ;;  %p458_p7 = scmp.lt.s32.totalorder %s452_s10, %s452_s10 }
  0x13   :  { %p459_p8 = por %p458_p7, %p457_p6 }
  0x15   :  { %p460_p9 = pnand %p459_p8, %p453_p5 }
  0x17   :  { %463 = shalt.err (!%p460_p9)
}
  0x18   :  { %46 = dma.hbm_to_vmem [thread:$0]  %s568_s5, 1024, %s41_s9, [#allocation6], %s491_s27, %s491_s27, %s492_s28  }
  0x19   :  { %484 = dma.done.wait [#allocation3], 1024  }
  0x1a   :  { %485 = vsyncadd [#allocation3], 4294966272 }
  0x1b   :  { %486 = dma.done.wait [#allocation6], 1024  }
  0x1c   :  { %487 = vsyncadd [#allocation6], 4294966272  ;;  %v494_v0 = vmov 0.0   ;;  %vm495_vm0 = vmmov 0   ;;  %v496_v1 = vmov 0   ;;  %v406_v2 = vld [vmem:[#allocation2 + $0x38] sm:$0xff]  }
  0x1d   :  { %355 = vmatprep.subr.bf16.mxu0 %v494_v0  ;;  %371 = vmatprep.mubr.msk.bf16.mxu0 %vm495_vm0, %v494_v0  ;;  %v407_v3 = vld [vmem:[#allocation2 + $0x30] sm:$0xff]   ;;  %v408_v4 = vld [vmem:[#allocation2 + $0x28] sm:$0xff]   ;;  %v56_v5 = vld [vmem:[%s563_s0] sm:$0xff]  ;;  %v497_v20 = vmov 1  }
  0x1e   :  { %404 = vset.pattern.permute.xlu0 %v496_v1  ;;  %375 = vmatprep.subr.bf16.mxu1 %v494_v0  ;;  %v414_v6 = vld [vmem:[#allocation5 + $0x38] sm:$0xff]   ;;  %v409_v7 = vld [vmem:[#allocation2 + $0x20] sm:$0xff]   ;;  %v415_v8 = vld [vmem:[#allocation5 + $0x30] sm:$0xff]  }
  0x1f   :  { %391 = vmatprep.mubr.msk.bf16.mxu1 %vm495_vm0, %v494_v0  ;;  %356 = vmatpush3.bf16.msra.mxu0 %v406_v2  ;;  %v410_v9 = vld [vmem:[#allocation2 + $0x18] sm:$0xff]   ;;  %v416_v10 = vld [vmem:[#allocation5 + $0x28] sm:$0xff]   ;;  %v411_v11 = vld [vmem:[#allocation2 + $0x10] sm:$0xff]  }
  0x20   :  { %357 = vmatprep.subr.bf16.mxu0 %v494_v0  ;;  %172 = vperm.xlu0 %404, %v56_v5   ;;  %v412_v12 = vld [vmem:[#allocation2 + $0x8] sm:$0xff]   ;;  %v413_v13 = vld [vmem:[#allocation2] sm:$0xff]   ;;  %v418_v16 = vld [vmem:[#allocation5 + $0x18] sm:$0xff]  }
  0x21   :  { %376 = vmatpush3.bf16.msra.mxu1 %v414_v6  ;;  %v57_v14 = vld [vmem:[%s564_s1] sm:$0xf]  ;;  %v419_v17 = vld [vmem:[#allocation5 + $0x10] sm:$0xff]   ;;  %v420_v18 = vld [vmem:[#allocation5 + $0x8] sm:$0xff]  }
  0x22   :  { %377 = vmatprep.subr.bf16.mxu1 %v494_v0  ;;  %v417_v15 = vld [vmem:[#allocation5 + $0x20] sm:$0xff]  }
  0x23   :  { %358 = vmatpush3.bf16.msra.mxu0 %v407_v3  ;;  %v421_v19 = vld [vmem:[#allocation5] sm:$0xff]  }
  0x24   :  { %359 = vmatprep.subr.bf16.mxu0 %v494_v0  ;;  %405 = vset.pattern.permute.xlu0 %v497_v20  ;;  %v327_v21 = vld [vmem:[%s567_s4] ss:$0 sm:$0xff]  ;;  %s498_s4 = smov [#allocation7]  }
  0x25   :  { %378 = vmatpush3.bf16.msra.mxu1 %v415_v8  ;;  %297 = vperm.xlu0 %405, %v56_v5   ;;  %v318_v23 = vld [vmem:[%s566_s3] ss:$0 sm:$0xff]  ;;  %s308_s19 = sshll.u32 %s498_s4, 4  ;;  %s309_s19 = int_to_ptr.vmem [resolvable:$true] %s308_s19 }
  0x26   :  { %379 = vmatprep.subr.bf16.mxu1 %v494_v0  ;;  %v328_v33 = vld [vmem:[%s569_s6] ss:$0 sm:$0xff]  ;;  %s464_s3 = scalar_lea.vmem %s309_s19, 128  ;;  %p469_p11 = scmp.lt.s32.totalorder %s309_s19, %s309_s19 }
  0x27   :  { %360 = vmatpush3.bf16.msra.mxu0 %v408_v4  ;;  %p465_p10 = scmp.ne.s32.totalorder %s309_s19, %s464_s3  ;;  %p470_p12 = scmp.lt.s32.totalorder %s464_s3, %s464_s3 }
  0x28   :  { %361 = vmatprep.subr.bf16.mxu0 %v494_v0 }
  0x29   :  { %380 = vmatpush3.bf16.msra.mxu1 %v416_v10  ;;  %p471_p13 = por %p470_p12, %p469_p11 }
  0x2a   :  { %381 = vmatprep.subr.bf16.mxu1 %v494_v0 }
  0x2b   :  { %362 = vmatpush3.bf16.msra.mxu0 %v409_v7  ;;  %p472_p0 = pnand %p471_p13, %p465_p10 }
  0x2c   :  { %363 = vmatprep.subr.bf16.mxu0 %v494_v0 }
  0x2d   :  { %382 = vmatpush3.bf16.msra.mxu1 %v417_v15 }
  0x2e   :  { %383 = vmatprep.subr.bf16.mxu1 %v494_v0 }
  0x2f   :  { %364 = vmatpush3.bf16.msra.mxu0 %v410_v9 }
  0x30   :  { %365 = vmatprep.subr.bf16.mxu0 %v494_v0 }
  0x31   :  { %384 = vmatpush3.bf16.msra.mxu1 %v418_v16 }
  0x32   :  { %385 = vmatprep.subr.bf16.mxu1 %v494_v0 }
  0x33   :  { %366 = vmatpush3.bf16.msra.mxu0 %v411_v11 }
  0x34   :  { %367 = vmatprep.subr.bf16.mxu0 %v494_v0 }
  0x35   :  { %386 = vmatpush3.bf16.msra.mxu1 %v419_v17 }
  0x36   :  { %387 = vmatprep.subr.bf16.mxu1 %v494_v0 }
  0x37   :  { %368 = vmatpush3.bf16.msra.mxu0 %v412_v12 }
  0x38   :  { %369 = vmatprep.subr.bf16.mxu0 %v494_v0 }
  0x39   :  { %388 = vmatpush3.bf16.msra.mxu1 %v420_v18 }
  0x3a   :  { %389 = vmatprep.subr.bf16.mxu1 %v494_v0 }
  0x3b   :  { %370 = vmatpush3.bf16.msra.mxu0 %v413_v13 }
  0x3d   :  { %390 = vmatpush3.bf16.msra.mxu1 %v421_v19 }
  0x3e   :  { %372 = vmatmul.mubr.bf16.vlgmr.msra.gmra.mxu0 %v57_v14 }
  0x9b   :  { %v173_v22 = vpop.permute.xlu0 %172 }
  0x9c   :  { %v181_v24 = vmul.f32 %v327_v21, %v173_v22 }
  0xa0   :  { %v298_v35 = vpop.permute.xlu0 %297 }
  0xfe   :  { %v163_v25 = vpop.f32.mrf.mxu0 }
  0xff   :  { %v164_v26 = vadd.f32 %v318_v23, %v163_v25 }
 0x100   :  { %v373_v27 = vpop.f32.mrf.mxu0 }
 0x101   :  { %v182_v28 = vadd.f32 %v181_v24, %v164_v26 }
 0x102   :  { %v166_v29 = vpop.f32.mrf.mxu0 }
 0x103   :  { %422 = vtanh.f32 %v182_v28 }
 0x104   :  { %v374_v30 = vpop.f32.mrf.mxu0 }
 0x110   :  { %v423_v31 = vpop.eup %422 }
 0x111   :  { %v184_v32 = vpack.c.bf16 %v423_v31, %v423_v31 }
 0x113   :  { %392 = vmatmul.mubr.bf16.vlgmr.msra.gmra.mxu1 %v184_v32 }
 0x1d3   :  { %v290_v34 = vpop.f32.mrf.mxu1 }
 0x1d4   :  { %v291_v36 = vadd.f32 %v328_v33, %v290_v34 }
 0x1d5   :  { %v393_v37 = vpop.f32.mrf.mxu1 }
 0x1d6   :  { %v300_v38 = vmul.f32 %v298_v35, %v291_v36 }
 0x1d7   :  { %v293_v39 = vpop.f32.mrf.mxu1 }
 0x1d8   :  { %301 = vst [vmem:[#allocation7] sm:$0xff] %v300_v38 }
 0x1d9   :  { %v394_v40 = vpop.f32.mrf.mxu1 }
 0x1da   :  { %475 = shalt.err (!%p472_p0)
}
 0x1db   :  { %311 = dma.vmem_to_hbm [thread:$0]  %s309_s19, 128, %s570_s7, [#allocation4]  }
 0x1dc   :  { %488 = dma.done.wait [#allocation4], 128  }
 0x1dd   :  { %489 = vsyncadd [#allocation4], 4294967168 }
 0x1de   :  { %315 = vsyncpa [#allocation3], 1 }
 0x1df   :  { %316 = vsyncpa [#allocation6], 1 }
 0x1e0   :  { %317 = vsyncpa [#allocation4], 1 }

</bundles_post_ra>
